<compile_context>
chip_gen: v5e
topology: v5e:2x2
jax: 0.10.0
libtpu: 0.0.40
codegen_flags: <defaults>
</compile_context>

<pallas_src>
import jax
import jax.numpy as jnp
from jax.experimental import pallas as pl
from jax.experimental.pallas import tpu as pltpu

LANES = 128
MAX_BLOCK_CHUNKS = 1024   # 1024 chunks * 4 KiB/chunk = 4 MiB per input block


def _sublanes_for(dtype) -> int:
    # Native packed sublane count per 4 KiB chunk: 8 (4B), 16 (2B), 32 (1B).
    return {4: 8, 2: 16, 1: 32}.get(jnp.dtype(dtype).itemsize, 8)


def _num_tensorcores() -> int:
    """Best-effort TensorCore count; conservative fallback of 1."""
    try:
        info = pltpu.get_tpu_info()
        for attr in ("num_cores", "core_count", "num_tensorcores", "tensorcore_count"):
            v = getattr(info, attr, None)
            if v is not None:
                try:
                    v = int(v)
                except Exception:
                    continue
                if v >= 1:
                    return v
    except Exception:
        pass
    try:
        v = getattr(jax.devices()[0], "num_cores", None)
        if v is not None and int(v) >= 1:
            return int(v)
    except Exception:
        pass
    return 1


def _make_kernel(tpc, n_blocks, tmc, rem, has_phantom):
    """rem = valid chunks in the last block; ragged iff rem != tmc."""
    ragged = rem != tmc
    last = n_blocks - 1

    def accumulate(x_ref, o_ref, mask_last):
        x = x_ref[...].astype(jnp.float32)   # f32 VPU compute on all chip gens
        d = jnp.abs(x) - 1.0
        sq = d * d
        if mask_last:
            # Only the single ragged last block pays for this select.
            chunk_idx = jax.lax.broadcasted_iota(jnp.int32, sq.shape, 0)
            sq = jnp.where(chunk_idx < rem, sq, 0.0)
        # VPU-only partial reduction into the resident (1, sublanes, 128) block.
        o_ref[...] += jnp.sum(sq, axis=0, keepdims=True)

    def kernel(x_ref, o_ref):
        c = pl.program_id(0)
        i = pl.program_id(1)
        blk = c * tpc + i   # logical (unclamped) block index

        @pl.when(i == 0)
        def _init():
            o_ref[...] = jnp.zeros_like(o_ref)

        if ragged:
            @pl.when(blk < last)
            def _full_blocks():
                accumulate(x_ref, o_ref, False)

            @pl.when(blk == last)
            def _ragged_last():
                accumulate(x_ref, o_ref, True)
            # blk > last (phantom) blocks fall through and contribute nothing.
        elif has_phantom:
            @pl.when(blk < n_blocks)
            def _guarded():
                accumulate(x_ref, o_ref, False)
        else:
            accumulate(x_ref, o_ref, False)

    return kernel


@jax.jit
def quantization_loss(relaxed_codes):
    """Pallas implementation of QuantizationLoss.forward. Returns a scalar f32."""
    flat = relaxed_codes.reshape(-1)
    n = flat.shape[0]

    sublanes = _sublanes_for(flat.dtype)
    chunk_elems = sublanes * LANES
    chunks = n // chunk_elems
    tail = n - chunks * chunk_elems

    # Ragged tail (< one 4 KiB chunk): tiny plain-JAX sum, no whole-tensor pad.
    tail_sum = jnp.float32(0.0)
    if tail:
        td = jnp.abs(flat[chunks * chunk_elems:].astype(jnp.float32)) - 1.0
        tail_sum = jnp.sum(td * td)

    if chunks == 0:
        return tail_sum / jnp.float32(n)

    body = flat[: chunks * chunk_elems] if tail else flat
    x3d = body.reshape(chunks, sublanes, LANES)   # free row-major view when aligned

    tmc = min(MAX_BLOCK_CHUNKS, chunks)           # chunks per grid block (<= 4 MiB)
    n_blocks = -(-chunks // tmc)
    n_outer = min(_num_tensorcores(), n_blocks)   # no phantom split on 1-TC chips
    tpc = -(-n_blocks // n_outer)                 # blocks per core
    rem = chunks - (n_blocks - 1) * tmc           # valid chunks in the last block
    has_phantom = (n_outer * tpc) != n_blocks

    if has_phantom:
        last = n_blocks - 1
        # Phantom blocks clamp onto the last real block; their compute is
        # skipped by the scalar pl.when guard inside the kernel.
        in_index = lambda c, i: (jnp.minimum(c * tpc + i, last), 0, 0)
    else:
        in_index = lambda c, i: (c * tpc + i, 0, 0)

    itemsize = jnp.dtype(flat.dtype).itemsize
    cost = pl.CostEstimate(
        flops=3 * chunks * chunk_elems,
        transcendentals=0,
        bytes_accessed=chunks * chunk_elems * itemsize + n_outer * chunk_elems * 4,
    )

    partials = pl.pallas_call(
        _make_kernel(tpc, n_blocks, tmc, rem, has_phantom),
        out_shape=jax.ShapeDtypeStruct((n_outer, sublanes, LANES), jnp.float32),
        grid_spec=pltpu.PrefetchScalarGridSpec(
            num_scalar_prefetch=0,
            grid=(n_outer, tpc),
            in_specs=[pl.BlockSpec((tmc, sublanes, LANES), in_index)],
            out_specs=pl.BlockSpec((1, sublanes, LANES), lambda c, i: (c, 0, 0)),
        ),
        compiler_params=pltpu.CompilerParams(
            dimension_semantics=("parallel", "arbitrary"),
        ),
        cost_estimate=cost,
    )(x3d)

    # Final tiny cross-lane/sublane reduce (<= n_outer*sublanes*128 floats) in JAX.
    return (jnp.sum(partials) + tail_sum) / jnp.float32(n)


def quantization_loss_ref(relaxed_codes):
    d = jnp.abs(relaxed_codes.astype(jnp.float32)) - 1.0
    return jnp.mean(jnp.abs(d * d))


if __name__ == "__main__":
    key = jax.random.PRNGKey(0)
    # Shape consistent with relaxed codes of a conv-style tensor (NCHW).
    x = jax.random.normal(key, (2, 4, 16, 16), dtype=jnp.float32)

    out = jax.block_until_ready(quantization_loss(x))
    ref = quantization_loss_ref(x)
    assert jnp.allclose(out, ref, rtol=1e-5, atol=1e-5), (out, ref)

    # Exercise the non-multiple-of-4KiB (tail) path as well.
    x2 = jax.random.normal(jax.random.PRNGKey(0), (2, 4, 15, 15), dtype=jnp.float32)
    out2 = jax.block_until_ready(quantization_loss(x2))
    ref2 = quantization_loss_ref(x2)
    assert jnp.allclose(out2, ref2, rtol=1e-5, atol=1e-5), (out2, ref2)

    print("KERNEL_OK")
</pallas_src>

<mosaic_0001>
module attributes {stable_mosaic.version = 11 : i64} {
  func.func @kernel(%arg0: i32, %arg1: i32, %arg2: memref<2x8x128xf32, #tpu.memory_space<vmem>>, %arg3: memref<1x8x128xf32, #tpu.memory_space<vmem>>) attributes {dimension_semantics = [#tpu.dimension_semantics<parallel>, #tpu.dimension_semantics<arbitrary>], iteration_bounds = array<i64: 1, 1>, scalar_prefetch = 0 : i64, scratch_operands = 0 : i64, tpu.core_type = #tpu.core_type<tc>, window_params = [{transform_indices = @transform_0, window_bounds = array<i64: 2, 8, 128>}, {transform_indices = @transform_1, window_bounds = array<i64: 1, 8, 128>}]} {
    %c0_i32 = arith.constant 0 : i32
    %0 = arith.cmpi eq, %arg1, %c0_i32 : i32
    %1 = arith.extui %0 : i1 to i32
    %c0_i32_0 = arith.constant 0 : i32
    %2 = arith.cmpi ne, %1, %c0_i32_0 : i32
    scf.if %2 {
      %cst_10 = arith.constant 0.000000e+00 : f32
      %13 = vector.broadcast %cst_10 : f32 to vector<1x8x128xf32>
      %c0_11 = arith.constant 0 : index
      %c0_12 = arith.constant 0 : index
      %c0_13 = arith.constant 0 : index
      %14 = vector.load %arg3[%c0_11, %c0_12, %c0_13] : memref<1x8x128xf32, #tpu.memory_space<vmem>>, vector<1x8x128xf32>
      tpu.vector_store %arg3[%c0_11, %c0_12, %c0_13], %13 {strides = array<i32>} : memref<1x8x128xf32, #tpu.memory_space<vmem>>, vector<1x8x128xf32>,
    } else {
    }
    %c0 = arith.constant 0 : index
    %c0_1 = arith.constant 0 : index
    %c0_2 = arith.constant 0 : index
    %3 = vector.load %arg2[%c0, %c0_1, %c0_2] : memref<2x8x128xf32, #tpu.memory_space<vmem>>, vector<2x8x128xf32>
    %4 = math.absf %3 : vector<2x8x128xf32>
    %cst = arith.constant 1.000000e+00 : f32
    %5 = vector.broadcast %cst : f32 to vector<2x8x128xf32>
    %6 = arith.subf %4, %5 : vector<2x8x128xf32>
    %7 = arith.mulf %6, %6 : vector<2x8x128xf32>
    %c0_3 = arith.constant 0 : index
    %c0_4 = arith.constant 0 : index
    %c0_5 = arith.constant 0 : index
    %8 = vector.load %arg3[%c0_3, %c0_4, %c0_5] : memref<1x8x128xf32, #tpu.memory_space<vmem>>, vector<1x8x128xf32>
    %cst_6 = arith.constant dense<0.000000e+00> : vector<8x128xf32>
    %9 = vector.multi_reduction <add>, %7, %cst_6 [0] : vector<2x8x128xf32> to vector<8x128xf32>
    %10 = vector.shape_cast %9 : vector<8x128xf32> to vector<1x8x128xf32>
    %11 = arith.addf %8, %10 : vector<1x8x128xf32>
    %c0_7 = arith.constant 0 : index
    %c0_8 = arith.constant 0 : index
    %c0_9 = arith.constant 0 : index
    %12 = vector.load %arg3[%c0_7, %c0_8, %c0_9] : memref<1x8x128xf32, #tpu.memory_space<vmem>>, vector<1x8x128xf32>
    tpu.vector_store %arg3[%c0_7, %c0_8, %c0_9], %11 {strides = array<i32>} : memref<1x8x128xf32, #tpu.memory_space<vmem>>, vector<1x8x128xf32>,
    return
  }
  func.func @transform_0(%arg0: i32, %arg1: i32) -> (i32, i32, i32) {
    %c1_i32 = arith.constant 1 : i32
    %0 = arith.muli %arg0, %c1_i32 : i32
    %1 = arith.addi %0, %arg1 : i32
    %c0_i32 = arith.constant 0 : i32
    %c0_i32_0 = arith.constant 0 : i32
    %c0_i32_1 = arith.constant 0 : i32
    return %1, %c0_i32, %c0_i32_0 : i32, i32, i32
  }
  func.func @transform_1(%arg0: i32, %arg1: i32) -> (i32, i32, i32) {
    %c0_i32 = arith.constant 0 : i32
    %c0_i32_0 = arith.constant 0 : i32
    %c0_i32_1 = arith.constant 0 : i32
    return %arg0, %c0_i32, %c0_i32_0 : i32, i32, i32
  }
}

</mosaic_0001>

<bundles_post_ra>
// kernel: quantization_loss.1
= control target key start
LH: loop header
LB: loop body
LE: loop exit
PB: predicated region body
PF: predicated region fallthrough
CT: control target
= control target key end

     0   :  { %s79_s0 = inlined_call_operand.vmem [shape: f32[2,8,128], index: 0, kind: input, shape index: {}]   ;;  %s80_s1 = inlined_call_operand.vmem [shape: f32[1,8,128], index: 1, kind: output, shape index: {}]  }
   0x1   :  { %v35_v0 = vld [vmem:[%s79_s0] sm:$0xff]  ;;  %v36_v1 = vld [vmem:[%s79_s0 + $0x8] sm:$0xff] }
   0x2   :  { %v37_v2 = vand.u32 2147483647, %v35_v0  ;;  %v38_v3 = vand.u32 2147483647, %v36_v1 }
   0x4   :  { %v57_v4 = vadd.f32 -1.0, %v37_v2  ;;  %v58_v5 = vadd.f32 -1.0, %v38_v3 }
   0x6   :  { %v41_v6 = vmul.f32 %v57_v4, %v57_v4  ;;  %v42_v7 = vmul.f32 %v58_v5, %v58_v5 }
   0x8   :  { %v44_v8 = vadd.f32 %v42_v7, %v41_v6 }
   0xa   :  { %46 = vst [vmem:[%s80_s1] sm:$0xff] %v44_v8 }

</bundles_post_ra>
